<compile_context>
chip_gen: v5e
topology: v5e:2x2
jax: 0.10.0
libtpu: 0.0.40
codegen_flags: <defaults>
</compile_context>

<pallas_src>
import functools

import jax
import jax.numpy as jnp
from jax.experimental import pallas as pl
from jax.experimental.pallas import tpu as pltpu


# ----------------------- small synthetic config -----------------------------
class Cfg:
    vocab_size = 64
    max_position_embeddings = 64
    type_vocab_size = 2
    hidden_size = 128                 # H  (lane aligned)
    max_depth = 4                     # xpath depth
    xpath_unit_hidden_size = 32       # per-depth unit dim
    max_xpath_tag_unit_embeddings = 16
    max_xpath_subs_unit_embeddings = 16
    layer_norm_eps = 1e-12
    add_linear = True


def _round_up(x, m):
    return ((x + m - 1) // m) * m


# ------------------------------- kernel --------------------------------------
def _emb_kernel(xpath_ref, demb_ref,
                w_in_ref, b_in_ref, w_i2e_ref, b_i2e_ref,
                w1_ref, b1_ref, w2_ref, b2_ref,
                gamma_ref, beta_ref, out_ref, *, eps):
    # All matmuls: bf16 operands, f32 accumulation on the MXU.
    x = xpath_ref[...]                                            # (TM, D_xp) bf16

    # XPathEmbeddings MLP: inner2emb(dropout(relu(xpath_unitseq2_inner(x))))
    h1 = jnp.dot(x, w_in_ref[...],
                 preferred_element_type=jnp.float32) + b_in_ref[...]
    h1 = jnp.maximum(h1, 0.0).astype(jnp.bfloat16)                # ReLU
    # TODO(synk): nn.Dropout is identity in eval mode; training-mode dropout not implemented.
    xpath_emb = jnp.dot(h1, w_i2e_ref[...],
                        preferred_element_type=jnp.float32) + b_i2e_ref[...]

    # temp_embeddings = web_linear2(relu(web_linear1(xpath_emb)))
    t1 = jnp.dot(xpath_emb.astype(jnp.bfloat16), w1_ref[...],
                 preferred_element_type=jnp.float32) + b1_ref[...]
    t1 = jnp.maximum(t1, 0.0).astype(jnp.bfloat16)
    temp = jnp.dot(t1, w2_ref[...],
                   preferred_element_type=jnp.float32) + b2_ref[...]

    # dense embeddings (words + position + token_type) pre-summed in wrapper
    e = demb_ref[...] + temp                                      # (TM, H) f32

    # LayerNorm over hidden dim (biased variance, like torch.nn.LayerNorm)
    mu = jnp.mean(e, axis=-1, keepdims=True)
    var = jnp.mean((e - mu) * (e - mu), axis=-1, keepdims=True)
    norm = (e - mu) * jax.lax.rsqrt(var + eps)
    out_ref[...] = norm * gamma_ref[...] + beta_ref[...]


def layoutlmv1_embeddings_pallas(xpath_units, dense_emb, params, *, eps,
                                 tile_rows=256):
    """xpath_units: (R, D_xp), dense_emb: (R, H) with R = batch*seq.

    tile_rows: row-tile (matmul M).  256 is a good default for v6e/v7x
    (multiple of the 256-row MXU); 128-256 is preferred on v5e.  It is
    clamped to the (16-aligned) padded row count for small inputs.
    """
    R, H = dense_emb.shape
    D_xp = xpath_units.shape[1]

    # Row tile: multiple of 16 (bf16 sublane packing), no larger than needed.
    tm = min(tile_rows, _round_up(R, 16))
    R_pad = _round_up(R, tm)
    if R_pad != R:
        pad = R_pad - R
        xpath_units = jnp.pad(xpath_units, ((0, pad), (0, 0)))
        dense_emb = jnp.pad(dense_emb, ((0, pad), (0, 0)))

    # bf16 operands for the MXU; biases / LN params / dense sum stay f32.
    xpath_bf16 = xpath_units.astype(jnp.bfloat16)
    w_inner = params["w_inner"].astype(jnp.bfloat16)
    w_i2e = params["w_i2e"].astype(jnp.bfloat16)
    w_wl1 = params["w_wl1"].astype(jnp.bfloat16)
    w_wl2 = params["w_wl2"].astype(jnp.bfloat16)

    # Weights use a constant index_map so the same block is reused (no
    # re-DMA) across grid steps.
    full = lambda arr: pl.BlockSpec(arr.shape, lambda i: (0, 0))
    row_spec = lambda d: pl.BlockSpec((tm, d), lambda i: (i, 0))

    grid_spec = pltpu.PrefetchScalarGridSpec(
        num_scalar_prefetch=0,
        grid=(R_pad // tm,),
        in_specs=[
            row_spec(D_xp),                 # xpath_units (bf16)
            row_spec(H),                    # dense (words+pos+tok) sum (f32)
            full(w_inner), full(params["b_inner"]),
            full(w_i2e),   full(params["b_i2e"]),
            full(w_wl1),   full(params["b_wl1"]),
            full(w_wl2),   full(params["b_wl2"]),
            full(params["ln_gamma"]), full(params["ln_beta"]),
        ],
        out_specs=row_spec(H),
    )

    out = pl.pallas_call(
        functools.partial(_emb_kernel, eps=eps),
        out_shape=jax.ShapeDtypeStruct((R_pad, H), jnp.float32),
        grid_spec=grid_spec,
        compiler_params=pltpu.CompilerParams(
            dimension_semantics=("parallel",)),
    )(xpath_bf16, dense_emb,
      w_inner, params["b_inner"],
      w_i2e, params["b_i2e"],
      w_wl1, params["b_wl1"],
      w_wl2, params["b_wl2"],
      params["ln_gamma"], params["ln_beta"])

    return out[:R]


# --------------------------- parameter construction --------------------------
def make_params(key, cfg):
    H = cfg.hidden_size
    D_xp = cfg.xpath_unit_hidden_size * cfg.max_depth
    H4 = 4 * H
    ks = jax.random.split(key, 16)
    u = lambda k, shape, s=0.02: (jax.random.normal(k, shape, jnp.float32) * s)
    params = {
        # embedding tables
        "word_table": u(ks[0], (cfg.vocab_size, H)),
        "pos_table":  u(ks[1], (cfg.max_position_embeddings, H)),
        "type_table": u(ks[2], (cfg.type_vocab_size, H)),
        "tag_tables": u(ks[3], (cfg.max_depth, cfg.max_xpath_tag_unit_embeddings,
                                cfg.xpath_unit_hidden_size)),
        "subs_tables": u(ks[4], (cfg.max_depth, cfg.max_xpath_subs_unit_embeddings,
                                 cfg.xpath_unit_hidden_size)),
        # linear layers, stored (in, out); biases as (1, out) for VMEM 2-D layout
        "w_inner": u(ks[5], (D_xp, H4)), "b_inner": u(ks[6], (1, H4)),
        "w_i2e":   u(ks[7], (H4, H)),    "b_i2e":   u(ks[8], (1, H)),
        "w_wl1":   u(ks[9], (H, H)),     "b_wl1":   u(ks[10], (1, H)),
        "w_wl2":   u(ks[11], (H, H)),    "b_wl2":   u(ks[12], (1, H)),
        # layernorm (torch init: gamma=1, beta=0)
        "ln_gamma": jnp.ones((1, H), jnp.float32),
        "ln_beta":  jnp.zeros((1, H), jnp.float32),
    }
    # word_embeddings has padding_idx=0 -> row 0 zero
    params["word_table"] = params["word_table"].at[0].set(0.0)
    return params


# ------------------------------ full forward ---------------------------------
def forward(params, cfg, input_ids, xpath_tags_seq, xpath_subs_seq,
            token_type_ids=None, position_ids=None):
    B, S = input_ids.shape
    H = cfg.hidden_size
    if position_ids is None:
        position_ids = jnp.broadcast_to(
            jnp.arange(S, dtype=jnp.int32)[None, :], (B, S))
    if token_type_ids is None:
        token_type_ids = jnp.zeros_like(input_ids)

    # ---- glue: embedding-table gathers (plain JAX), pre-summed dense part ----
    dense_emb = (params["word_table"][input_ids]
                 + params["pos_table"][position_ids]
                 + params["type_table"][token_type_ids])          # (B,S,H)

    # xpath per-depth lookups, concat over depth, tags + subs
    tag_parts = [params["tag_tables"][i][xpath_tags_seq[:, :, i]]
                 for i in range(cfg.max_depth)]
    subs_parts = [params["subs_tables"][i][xpath_subs_seq[:, :, i]]
                  for i in range(cfg.max_depth)]
    xpath_units = (jnp.concatenate(tag_parts, axis=-1)
                   + jnp.concatenate(subs_parts, axis=-1))        # (B,S,D_xp)

    R = B * S
    out = layoutlmv1_embeddings_pallas(
        xpath_units.reshape(R, -1).astype(jnp.float32),
        dense_emb.reshape(R, H).astype(jnp.float32),
        params, eps=cfg.layer_norm_eps)
    return out.reshape(B, S, H)


# ------------------------------ JAX reference ---------------------------------
def forward_ref(params, cfg, input_ids, xpath_tags_seq, xpath_subs_seq):
    B, S = input_ids.shape
    position_ids = jnp.broadcast_to(
        jnp.arange(S, dtype=jnp.int32)[None, :], (B, S))
    token_type_ids = jnp.zeros_like(input_ids)
    words = params["word_table"][input_ids]
    pos = params["pos_table"][position_ids]
    tok = params["type_table"][token_type_ids]
    tag_parts = [params["tag_tables"][i][xpath_tags_seq[:, :, i]]
                 for i in range(cfg.max_depth)]
    subs_parts = [params["subs_tables"][i][xpath_subs_seq[:, :, i]]
                  for i in range(cfg.max_depth)]
    xp_units = jnp.concatenate(tag_parts, -1) + jnp.concatenate(subs_parts, -1)
    h1 = jax.nn.relu(xp_units @ params["w_inner"] + params["b_inner"][0])
    xp_emb = h1 @ params["w_i2e"] + params["b_i2e"][0]
    t = (jax.nn.relu(xp_emb @ params["w_wl1"] + params["b_wl1"][0])
         @ params["w_wl2"] + params["b_wl2"][0])
    e = words + pos + tok + t
    mu = e.mean(-1, keepdims=True)
    var = ((e - mu) ** 2).mean(-1, keepdims=True)
    return ((e - mu) * jax.lax.rsqrt(var + cfg.layer_norm_eps)
            * params["ln_gamma"][0] + params["ln_beta"][0])


# --------------------------------- main ---------------------------------------
if __name__ == "__main__":
    cfg = Cfg()
    B, S = 2, 8

    key = jax.random.PRNGKey(0)
    kp, k1, k2, k3 = jax.random.split(key, 4)
    params = make_params(kp, cfg)

    input_ids = jax.random.randint(k1, (B, S), 1, cfg.vocab_size, dtype=jnp.int32)
    xpath_tags_seq = jax.random.randint(
        k2, (B, S, cfg.max_depth), 0, cfg.max_xpath_tag_unit_embeddings,
        dtype=jnp.int32)
    xpath_subs_seq = jax.random.randint(
        k3, (B, S, cfg.max_depth), 0, cfg.max_xpath_subs_unit_embeddings,
        dtype=jnp.int32)

    out = forward(params, cfg, input_ids, xpath_tags_seq, xpath_subs_seq)
    out = jax.block_until_ready(out)

    ref = forward_ref(params, cfg, input_ids, xpath_tags_seq, xpath_subs_seq)
    assert out.shape == (B, S, cfg.hidden_size)
    # bf16 matmul operands (f32 accumulation) -> slightly looser tolerance vs f32 ref
    assert jnp.allclose(out, ref, atol=2e-2, rtol=2e-2), "mismatch vs JAX reference"

    print("KERNEL_OK")
</pallas_src>

<mosaic_0001>
module attributes {stable_mosaic.version = 11 : i64} {
  func.func @_emb_kernel(%arg0: i32, %arg1: memref<16x128xbf16, #tpu.memory_space<vmem>>, %arg2: memref<16x128xf32, #tpu.memory_space<vmem>>, %arg3: memref<128x512xbf16, #tpu.memory_space<vmem>>, %arg4: memref<1x512xf32, #tpu.memory_space<vmem>>, %arg5: memref<512x128xbf16, #tpu.memory_space<vmem>>, %arg6: memref<1x128xf32, #tpu.memory_space<vmem>>, %arg7: memref<128x128xbf16, #tpu.memory_space<vmem>>, %arg8: memref<1x128xf32, #tpu.memory_space<vmem>>, %arg9: memref<128x128xbf16, #tpu.memory_space<vmem>>, %arg10: memref<1x128xf32, #tpu.memory_space<vmem>>, %arg11: memref<1x128xf32, #tpu.memory_space<vmem>>, %arg12: memref<1x128xf32, #tpu.memory_space<vmem>>, %arg13: memref<16x128xf32, #tpu.memory_space<vmem>>) attributes {dimension_semantics = [#tpu.dimension_semantics<parallel>], iteration_bounds = array<i64: 1>, scalar_prefetch = 0 : i64, scratch_operands = 0 : i64, tpu.core_type = #tpu.core_type<tc>, window_params = [{transform_indices = @transform_0, window_bounds = array<i64: 16, 128>}, {transform_indices = @transform_1, window_bounds = array<i64: 16, 128>}, {pipeline_mode = #tpu.pipeline_mode<synchronous>, transform_indices = @transform_2, window_bounds = array<i64: 128, 512>}, {pipeline_mode = #tpu.pipeline_mode<synchronous>, transform_indices = @transform_3, window_bounds = array<i64: 1, 512>}, {pipeline_mode = #tpu.pipeline_mode<synchronous>, transform_indices = @transform_4, window_bounds = array<i64: 512, 128>}, {pipeline_mode = #tpu.pipeline_mode<synchronous>, transform_indices = @transform_5, window_bounds = array<i64: 1, 128>}, {pipeline_mode = #tpu.pipeline_mode<synchronous>, transform_indices = @transform_6, window_bounds = array<i64: 128, 128>}, {pipeline_mode = #tpu.pipeline_mode<synchronous>, transform_indices = @transform_7, window_bounds = array<i64: 1, 128>}, {pipeline_mode = #tpu.pipeline_mode<synchronous>, transform_indices = @transform_8, window_bounds = array<i64: 128, 128>}, {pipeline_mode = #tpu.pipeline_mode<synchronous>, transform_indices = @transform_9, window_bounds = array<i64: 1, 128>}, {pipeline_mode = #tpu.pipeline_mode<synchronous>, transform_indices = @transform_10, window_bounds = array<i64: 1, 128>}, {pipeline_mode = #tpu.pipeline_mode<synchronous>, transform_indices = @transform_11, window_bounds = array<i64: 1, 128>}, {transform_indices = @transform_12, window_bounds = array<i64: 16, 128>}]} {
    %c0 = arith.constant 0 : index
    %c0_0 = arith.constant 0 : index
    %0 = vector.load %arg1[%c0, %c0_0] : memref<16x128xbf16, #tpu.memory_space<vmem>>, vector<16x128xbf16>
    %c0_1 = arith.constant 0 : index
    %c0_2 = arith.constant 0 : index
    %1 = vector.load %arg3[%c0_1, %c0_2] : memref<128x512xbf16, #tpu.memory_space<vmem>>, vector<128x512xbf16>
    %cst = arith.constant dense<0.000000e+00> : vector<16x512xf32>
    %2 = tpu.matmul %0, %1, %cst {dimension_numbers = #tpu.dot_dimension_numbers<[1], [0], [0], [1], [0, 0, 1, 1], [], []>} : vector<16x128xbf16>, vector<128x512xbf16>, vector<16x512xf32> -> vector<16x512xf32>
    %c0_3 = arith.constant 0 : index
    %c0_4 = arith.constant 0 : index
    %3 = vector.load %arg4[%c0_3, %c0_4] : memref<1x512xf32, #tpu.memory_space<vmem>>, vector<1x512xf32>
    %4 = vector.broadcast %3 : vector<1x512xf32> to vector<16x512xf32>
    %5 = arith.addf %2, %4 : vector<16x512xf32>
    %cst_5 = arith.constant 0.000000e+00 : f32
    %6 = vector.broadcast %cst_5 : f32 to vector<16x512xf32>
    %7 = arith.maximumf %5, %6 : vector<16x512xf32>
    %8 = arith.truncf %7 : vector<16x512xf32> to vector<16x512xbf16>
    %c0_6 = arith.constant 0 : index
    %c0_7 = arith.constant 0 : index
    %9 = vector.load %arg5[%c0_6, %c0_7] : memref<512x128xbf16, #tpu.memory_space<vmem>>, vector<512x128xbf16>
    %cst_8 = arith.constant dense<0.000000e+00> : vector<16x128xf32>
    %10 = tpu.matmul %8, %9, %cst_8 {dimension_numbers = #tpu.dot_dimension_numbers<[1], [0], [0], [1], [0, 0, 1, 1], [], []>} : vector<16x512xbf16>, vector<512x128xbf16>, vector<16x128xf32> -> vector<16x128xf32>
    %c0_9 = arith.constant 0 : index
    %c0_10 = arith.constant 0 : index
    %11 = vector.load %arg6[%c0_9, %c0_10] : memref<1x128xf32, #tpu.memory_space<vmem>>, vector<1x128xf32>
    %12 = vector.broadcast %11 : vector<1x128xf32> to vector<16x128xf32>
    %13 = arith.addf %10, %12 : vector<16x128xf32>
    %14 = arith.truncf %13 : vector<16x128xf32> to vector<16x128xbf16>
    %c0_11 = arith.constant 0 : index
    %c0_12 = arith.constant 0 : index
    %15 = vector.load %arg7[%c0_11, %c0_12] : memref<128x128xbf16, #tpu.memory_space<vmem>>, vector<128x128xbf16>
    %cst_13 = arith.constant dense<0.000000e+00> : vector<16x128xf32>
    %16 = tpu.matmul %14, %15, %cst_13 {dimension_numbers = #tpu.dot_dimension_numbers<[1], [0], [0], [1], [0, 0, 1, 1], [], []>} : vector<16x128xbf16>, vector<128x128xbf16>, vector<16x128xf32> -> vector<16x128xf32>
    %c0_14 = arith.constant 0 : index
    %c0_15 = arith.constant 0 : index
    %17 = vector.load %arg8[%c0_14, %c0_15] : memref<1x128xf32, #tpu.memory_space<vmem>>, vector<1x128xf32>
    %18 = vector.broadcast %17 : vector<1x128xf32> to vector<16x128xf32>
    %19 = arith.addf %16, %18 : vector<16x128xf32>
    %cst_16 = arith.constant 0.000000e+00 : f32
    %20 = vector.broadcast %cst_16 : f32 to vector<16x128xf32>
    %21 = arith.maximumf %19, %20 : vector<16x128xf32>
    %22 = arith.truncf %21 : vector<16x128xf32> to vector<16x128xbf16>
    %c0_17 = arith.constant 0 : index
    %c0_18 = arith.constant 0 : index
    %23 = vector.load %arg9[%c0_17, %c0_18] : memref<128x128xbf16, #tpu.memory_space<vmem>>, vector<128x128xbf16>
    %cst_19 = arith.constant dense<0.000000e+00> : vector<16x128xf32>
    %24 = tpu.matmul %22, %23, %cst_19 {dimension_numbers = #tpu.dot_dimension_numbers<[1], [0], [0], [1], [0, 0, 1, 1], [], []>} : vector<16x128xbf16>, vector<128x128xbf16>, vector<16x128xf32> -> vector<16x128xf32>
    %c0_20 = arith.constant 0 : index
    %c0_21 = arith.constant 0 : index
    %25 = vector.load %arg10[%c0_20, %c0_21] : memref<1x128xf32, #tpu.memory_space<vmem>>, vector<1x128xf32>
    %26 = vector.broadcast %25 : vector<1x128xf32> to vector<16x128xf32>
    %27 = arith.addf %24, %26 : vector<16x128xf32>
    %c0_22 = arith.constant 0 : index
    %c0_23 = arith.constant 0 : index
    %28 = vector.load %arg2[%c0_22, %c0_23] : memref<16x128xf32, #tpu.memory_space<vmem>>, vector<16x128xf32>
    %29 = arith.addf %28, %27 : vector<16x128xf32>
    %cst_24 = arith.constant dense<0.000000e+00> : vector<16xf32>
    %30 = vector.multi_reduction <add>, %29, %cst_24 [1] : vector<16x128xf32> to vector<16xf32>
    %31 = vector.shape_cast %30 : vector<16xf32> to vector<16x1xf32>
    %cst_25 = arith.constant 1.280000e+02 : f32
    %32 = vector.broadcast %cst_25 : f32 to vector<16x1xf32>
    %33 = arith.divf %31, %32 : vector<16x1xf32>
    %34 = vector.broadcast %33 : vector<16x1xf32> to vector<16x128xf32>
    %35 = arith.subf %29, %34 : vector<16x128xf32>
    %36 = vector.broadcast %33 : vector<16x1xf32> to vector<16x128xf32>
    %37 = arith.subf %29, %36 : vector<16x128xf32>
    %38 = arith.mulf %35, %37 : vector<16x128xf32>
    %cst_26 = arith.constant dense<0.000000e+00> : vector<16xf32>
    %39 = vector.multi_reduction <add>, %38, %cst_26 [1] : vector<16x128xf32> to vector<16xf32>
    %40 = vector.shape_cast %39 : vector<16xf32> to vector<16x1xf32>
    %cst_27 = arith.constant 1.280000e+02 : f32
    %41 = vector.broadcast %cst_27 : f32 to vector<16x1xf32>
    %42 = arith.divf %40, %41 : vector<16x1xf32>
    %43 = vector.broadcast %33 : vector<16x1xf32> to vector<16x128xf32>
    %44 = arith.subf %29, %43 : vector<16x128xf32>
    %cst_28 = arith.constant 9.99999996E-13 : f32
    %45 = vector.broadcast %cst_28 : f32 to vector<16x1xf32>
    %46 = arith.addf %42, %45 : vector<16x1xf32>
    %47 = math.rsqrt %46 : vector<16x1xf32>
    %48 = vector.broadcast %47 : vector<16x1xf32> to vector<16x128xf32>
    %49 = arith.mulf %44, %48 : vector<16x128xf32>
    %c0_29 = arith.constant 0 : index
    %c0_30 = arith.constant 0 : index
    %50 = vector.load %arg11[%c0_29, %c0_30] : memref<1x128xf32, #tpu.memory_space<vmem>>, vector<1x128xf32>
    %51 = vector.broadcast %50 : vector<1x128xf32> to vector<16x128xf32>
    %52 = arith.mulf %49, %51 : vector<16x128xf32>
    %c0_31 = arith.constant 0 : index
    %c0_32 = arith.constant 0 : index
    %53 = vector.load %arg12[%c0_31, %c0_32] : memref<1x128xf32, #tpu.memory_space<vmem>>, vector<1x128xf32>
    %54 = vector.broadcast %53 : vector<1x128xf32> to vector<16x128xf32>
    %55 = arith.addf %52, %54 : vector<16x128xf32>
    %c0_33 = arith.constant 0 : index
    %c0_34 = arith.constant 0 : index
    %56 = vector.load %arg13[%c0_33, %c0_34] : memref<16x128xf32, #tpu.memory_space<vmem>>, vector<16x128xf32>
    tpu.vector_store %arg13[%c0_33, %c0_34], %55 {strides = array<i32>} : memref<16x128xf32, #tpu.memory_space<vmem>>, vector<16x128xf32>,
    return
  }
  func.func @transform_0(%arg0: i32) -> (i32, i32) {
    %c0_i32 = arith.constant 0 : i32
    %c0_i32_0 = arith.constant 0 : i32
    return %arg0, %c0_i32 : i32, i32
  }
  func.func @transform_1(%arg0: i32) -> (i32, i32) {
    %c0_i32 = arith.constant 0 : i32
    %c0_i32_0 = arith.constant 0 : i32
    return %arg0, %c0_i32 : i32, i32
  }
  func.func @transform_2(%arg0: i32) -> (i32, i32) {
    %c0_i32 = arith.constant 0 : i32
    %c0_i32_0 = arith.constant 0 : i32
    %c0_i32_1 = arith.constant 0 : i32
    return %c0_i32, %c0_i32_0 : i32, i32
  }
  func.func @transform_3(%arg0: i32) -> (i32, i32) {
    %c0_i32 = arith.constant 0 : i32
    %c0_i32_0 = arith.constant 0 : i32
    %c0_i32_1 = arith.constant 0 : i32
    return %c0_i32, %c0_i32_0 : i32, i32
  }
  func.func @transform_4(%arg0: i32) -> (i32, i32) {
    %c0_i32 = arith.constant 0 : i32
    %c0_i32_0 = arith.constant 0 : i32
    %c0_i32_1 = arith.constant 0 : i32
    return %c0_i32, %c0_i32_0 : i32, i32
  }
  func.func @transform_5(%arg0: i32) -> (i32, i32) {
    %c0_i32 = arith.constant 0 : i32
    %c0_i32_0 = arith.constant 0 : i32
    %c0_i32_1 = arith.constant 0 : i32
    return %c0_i32, %c0_i32_0 : i32, i32
  }
  func.func @transform_6(%arg0: i32) -> (i32, i32) {
    %c0_i32 = arith.constant 0 : i32
    %c0_i32_0 = arith.constant 0 : i32
    %c0_i32_1 = arith.constant 0 : i32
    return %c0_i32, %c0_i32_0 : i32, i32
  }
  func.func @transform_7(%arg0: i32) -> (i32, i32) {
    %c0_i32 = arith.constant 0 : i32
    %c0_i32_0 = arith.constant 0 : i32
    %c0_i32_1 = arith.constant 0 : i32
    return %c0_i32, %c0_i32_0 : i32, i32
  }
  func.func @transform_8(%arg0: i32) -> (i32, i32) {
    %c0_i32 = arith.constant 0 : i32
    %c0_i32_0 = arith.constant 0 : i32
    %c0_i32_1 = arith.constant 0 : i32
    return %c0_i32, %c0_i32_0 : i32, i32
  }
  func.func @transform_9(%arg0: i32) -> (i32, i32) {
    %c0_i32 = arith.constant 0 : i32
    %c0_i32_0 = arith.constant 0 : i32
    %c0_i32_1 = arith.constant 0 : i32
    return %c0_i32, %c0_i32_0 : i32, i32
  }
  func.func @transform_10(%arg0: i32) -> (i32, i32) {
    %c0_i32 = arith.constant 0 : i32
    %c0_i32_0 = arith.constant 0 : i32
    %c0_i32_1 = arith.constant 0 : i32
    return %c0_i32, %c0_i32_0 : i32, i32
  }
  func.func @transform_11(%arg0: i32) -> (i32, i32) {
    %c0_i32 = arith.constant 0 : i32
    %c0_i32_0 = arith.constant 0 : i32
    %c0_i32_1 = arith.constant 0 : i32
    return %c0_i32, %c0_i32_0 : i32, i32
  }
  func.func @transform_12(%arg0: i32) -> (i32, i32) {
    %c0_i32 = arith.constant 0 : i32
    %c0_i32_0 = arith.constant 0 : i32
    return %arg0, %c0_i32 : i32, i32
  }
}

</mosaic_0001>

<bundles_post_ra>
// kernel: tpu_custom_call.1
= control target key start
LH: loop header
LB: loop body
LE: loop exit
PB: predicated region body
PF: predicated region fallthrough
CT: control target
= control target key end

     0   :  { %17 = vsyncpa [#allocation3], 0  ;;  %s1768_s0 = inlined_call_operand.hbm [shape: bf16[16,128], index: 0, kind: input, shape index: {}]   ;;  %s1769_s1 = inlined_call_operand.hbm [shape: f32[16,128], index: 1, kind: input, shape index: {}]   ;;  %s1770_s2 = inlined_call_operand.hbm [shape: bf16[128,512], index: 2, kind: input, shape index: {}]   ;;  %s1771_s3 = inlined_call_operand.hbm [shape: f32[1,512], index: 3, kind: input, shape index: {}]   ;;  %s1772_s4 = inlined_call_operand.hbm [shape: bf16[512,128], index: 4, kind: input, shape index: {}]   ;;  %s1773_s5 = inlined_call_operand.vmem [shape: f32[1,128], index: 5, kind: input, shape index: {}]   ;;  %s1774_s6 = inlined_call_operand.hbm [shape: bf16[128,128], index: 6, kind: input, shape index: {}]   ;;  %s1775_s7 = inlined_call_operand.vmem [shape: f32[1,128], index: 7, kind: input, shape index: {}]   ;;  %s1776_s8 = inlined_call_operand.hbm [shape: bf16[128,128], index: 8, kind: input, shape index: {}]   ;;  %s1777_s9 = inlined_call_operand.vmem [shape: f32[1,128], index: 9, kind: input, shape index: {}]   ;;  %s1778_s10 = inlined_call_operand.vmem [shape: f32[1,128], index: 10, kind: input, shape index: {}]   ;;  %s1779_s11 = inlined_call_operand.vmem [shape: f32[1,128], index: 11, kind: input, shape index: {}]   ;;  %s1780_s12 = inlined_call_operand.hbm [shape: f32[16,128], index: 12, kind: output, shape index: {}]  }
   0x1   :  { %18 = vsyncpa [#allocation6], 0 }
   0x2   :  { %19 = vsyncpa [#allocation9], 0 }
   0x3   :  { %20 = vsyncpa [#allocation12], 0  ;;  %s39_s23 = sshll.u32 %s1769_s1, 4  ;;  %s40_s23 = int_to_ptr.hbm [resolvable:$true] %s39_s23 }
   0x4   :  { %21 = vsyncpa [#allocation4], 0  ;;  %s1631_s24 = smov [#allocation5]   ;;  %s66_s28 = sshll.u32 %s1771_s3, 4  ;;  %s67_s28 = int_to_ptr.hbm [resolvable:$true] %s66_s28 }
   0x5   :  { %s41_s25 = sshll.u32 %s1631_s24, 4  ;;  %s1632_s29 = smov 128   ;;  %s42_s25 = int_to_ptr.vmem [resolvable:$true] %s41_s25 }
   0x6   :  { %s1633_s30 = smov 8   ;;  %s1634_s13 = smov [#allocation8]  }
   0x7   :  { %47 = dma.hbm_to_vmem [thread:$0]  %s40_s23, 256, %s42_s25, [#allocation6], %s1632_s29, %s1632_s29, %s1633_s30  }
   0x8   :  { %s68_s14 = sshll.u32 %s1634_s13, 4  ;;  %s91_s16 = sshll.u32 %s1774_s6, 4  ;;  %s69_s14 = int_to_ptr.vmem [resolvable:$true] %s68_s14  ;;  %s92_s16 = int_to_ptr.hbm [resolvable:$true] %s91_s16 }
   0x9   :  { %71 = dma.hbm_to_vmem [thread:$0]  %s67_s28, 64, %s69_s14, [#allocation9]  }
   0xa   :  { %s1635_s17 = smov [#allocation11]   ;;  %s26_s20 = sshll.u32 %s1768_s0, 4  ;;  %s27_s20 = int_to_ptr.hbm [resolvable:$true] %s26_s20 }
   0xb   :  { %s93_s18 = sshll.u32 %s1635_s17, 4  ;;  %s1636_s21 = smov 64   ;;  %s94_s18 = int_to_ptr.vmem [resolvable:$true] %s93_s18 }
   0xc   :  { %s1637_s22 = smov 4   ;;  %s1638_s23 = smov [#allocation2]  }
   0xd   :  { %99 = dma.hbm_to_vmem [thread:$0]  %s92_s16, 1024, %s94_s18, [#allocation12], %s1636_s21, %s1636_s21, %s1637_s22  }
   0xe   :  { %s28_s24 = sshll.u32 %s1638_s23, 4  ;;  %s52_s6 = sshll.u32 %s1770_s2, 4  ;;  %s29_s24 = int_to_ptr.vmem [resolvable:$true] %s28_s24  ;;  %s53_s6 = int_to_ptr.hbm [resolvable:$true] %s52_s6 }
   0xf   :  { %34 = dma.hbm_to_vmem [thread:$0]  %s27_s20, 128, %s29_s24, [#allocation3], %s1636_s21, %s1636_s21, %s1637_s22  }
  0x10   :  { %s1639_s0 = smov [#allocation7]   ;;  %s76_s14 = sshll.u32 %s1772_s4, 4  ;;  %s77_s14 = int_to_ptr.hbm [resolvable:$true] %s76_s14 }
  0x11   :  { %s54_s27 = sshll.u32 %s1639_s0, 4  ;;  %s1640_s1 = smov 256   ;;  %s55_s27 = int_to_ptr.vmem [resolvable:$true] %s54_s27 }
  0x12   :  { %s1641_s15 = smov 16   ;;  %s1642_s16 = smov [#allocation10]  }
  0x13   :  { %60 = dma.hbm_to_vmem [thread:$0]  %s53_s6, 4096, %s55_s27, [#allocation6], %s1640_s1, %s1640_s1, %s1641_s15  }
  0x14   :  { %s78_s17 = sshll.u32 %s1642_s16, 4  ;;  %s106_s3 = sshll.u32 %s1776_s8, 4  ;;  %s79_s17 = int_to_ptr.vmem [resolvable:$true] %s78_s17  ;;  %s107_s3 = int_to_ptr.hbm [resolvable:$true] %s106_s3 }
  0x15   :  { %84 = dma.hbm_to_vmem [thread:$0]  %s77_s14, 4096, %s79_s17, [#allocation9], %s1636_s21, %s1636_s21, %s1637_s22  }
  0x16   :  { %s1643_s19 = smov [#allocation13]  }
  0x17   :  { %s108_s20 = sshll.u32 %s1643_s19, 4  ;;  %s109_s20 = int_to_ptr.vmem [resolvable:$true] %s108_s20 }
  0x18   :  { %114 = dma.hbm_to_vmem [thread:$0]  %s107_s3, 1024, %s109_s20, [#allocation12], %s1636_s21, %s1636_s21, %s1637_s22  }
  0x19   :  { %1621 = dma.done.wait [#allocation3], 128  }
  0x1a   :  { %1622 = vsyncadd [#allocation3], 4294967168 }
  0x1b   :  { %1623 = dma.done.wait [#allocation6], 4352  }
  0x1c   :  { %1624 = vsyncadd [#allocation6], 4294962944 }
  0x1d   :  { %1625 = dma.done.wait [#allocation9], 4160  }
  0x1e   :  { %1626 = vsyncadd [#allocation9], 4294963136 }
  0x1f   :  { %1627 = dma.done.wait [#allocation12], 2048  }
  0x20   :  { %1628 = vsyncadd [#allocation12], 4294965248  ;;  %v1116_v0 = vld [vmem:[#allocation7 + $0xe0] sm:$0xf]  ;;  %v1353_v1 = vld [vmem:[#allocation7 + $0xec] sm:$0xf0] }
  0x21   :  { %v1351_v2 = vld [vmem:[#allocation7 + $0xe4] sm:$0xf]  ;;  %v1117_v3 = vor.u32 %v1353_v1, %v1116_v0  ;;  %v1118_v4 = vld [vmem:[#allocation7 + $0xf0] sm:$0xf0]  ;;  %v1124_v5 = vld [vmem:[#allocation7 + $0xe8] sm:$0xf] }
  0x22   :  { %v1354_v6 = vld [vmem:[#allocation7 + $0xf4] sm:$0xf0]  ;;  %v1121_v7 = vor.u32 %v1351_v2, %v1118_v4  ;;  %v1352_v9 = vld [vmem:[#allocation7 + $0xec] sm:$0xf]  ;;  %v1126_v10 = vld [vmem:[#allocation7 + $0xf8] sm:$0xf0] }
  0x23   :  { %v1125_v8 = vor.u32 %v1354_v6, %v1124_v5  ;;  %v1100_v11 = vld [vmem:[#allocation7 + $0xc0] sm:$0xf]  ;;  %359 = vmatpush.bf16.msra.mxu0 %v1117_v3  ;;  %v1129_v12 = vor.u32 %v1352_v9, %v1126_v10  ;;  %v1349_v13 = vld [vmem:[#allocation7 + $0xcc] sm:$0xf0]  ;;  %v1347_v14 = vld [vmem:[#allocation7 + $0xc4] sm:$0xf] }
  0x24   :  { %v1102_v15 = vld [vmem:[#allocation7 + $0xd0] sm:$0xf0]  ;;  %373 = vmatpush.bf16.msra.mxu1 %v1121_v7  ;;  %v1101_v16 = vor.u32 %v1349_v13, %v1100_v11  ;;  %v1108_v18 = vld [vmem:[#allocation7 + $0xc8] sm:$0xf]  ;;  %v1350_v19 = vld [vmem:[#allocation7 + $0xd4] sm:$0xf0] }
  0x25   :  { %387 = vmatpush.bf16.msra.mxu2 %v1125_v8  ;;  %v1105_v17 = vor.u32 %v1347_v14, %v1102_v15  ;;  %v1348_v20 = vld [vmem:[#allocation7 + $0xcc] sm:$0xf]  ;;  %401 = vmatpush.bf16.msra.mxu3 %v1129_v12  ;;  %v1109_v21 = vor.u32 %v1350_v19, %v1108_v18  ;;  %v1110_v22 = vld [vmem:[#allocation7 + $0xd8] sm:$0xf0]  ;;  %v1084_v23 = vld [vmem:[#allocation7 + $0xa0] sm:$0xf] }
  0x26   :  { %v1345_v24 = vld [vmem:[#allocation7 + $0xac] sm:$0xf0]  ;;  %v1113_v25 = vor.u32 %v1348_v20, %v1110_v22  ;;  %v1343_v26 = vld [vmem:[#allocation7 + $0xa4] sm:$0xf]  ;;  %v1086_v27 = vld [vmem:[#allocation7 + $0xb0] sm:$0xf0] }
  0x27   :  { %v1092_v28 = vld [vmem:[#allocation7 + $0xa8] sm:$0xf]  ;;  %360 = vmatpush.bf16.msra.mxu0 %v1101_v16  ;;  %v1085_v29 = vor.u32 %v1345_v24, %v1084_v23  ;;  %v1346_v30 = vld [vmem:[#allocation7 + $0xb4] sm:$0xf0]  ;;  %v1344_v31 = vld [vmem:[#allocation7 + $0xac] sm:$0xf]  ;;  %v1089_v33 = vor.u32 %v1343_v26, %v1086_v27 }
  0x28   :  { %v1094_v32 = vld [vmem:[#allocation7 + $0xb8] sm:$0xf0]  ;;  %374 = vmatpush.bf16.msra.mxu1 %v1105_v17  ;;  %v1093_v34 = vor.u32 %v1346_v30, %v1092_v28  ;;  %v1068_v35 = vld [vmem:[#allocation7 + $0x80] sm:$0xf]  ;;  %v1341_v36 = vld [vmem:[#allocation7 + $0x8c] sm:$0xf0] }
  0x29   :  { %388 = vmatpush.bf16.msra.mxu2 %v1109_v21  ;;  %v1339_v37 = vld [vmem:[#allocation7 + $0x84] sm:$0xf]  ;;  %402 = vmatpush.bf16.msra.mxu3 %v1113_v25  ;;  %v1097_v38 = vor.u32 %v1344_v31, %v1094_v32  ;;  %v1070_v39 = vld [vmem:[#allocation7 + $0x90] sm:$0xf0]  ;;  %v1076_v40 = vld [vmem:[#allocation7 + $0x88] sm:$0xf]  ;;  %v1069_v44 = vor.u32 %v1341_v36, %v1068_v35 }
  0x2a   :  { %v1342_v41 = vld [vmem:[#allocation7 + $0x94] sm:$0xf0]  ;;  %v1340_v42 = vld [vmem:[#allocation7 + $0x8c] sm:$0xf]  ;;  %v1078_v43 = vld [vmem:[#allocation7 + $0x98] sm:$0xf0]  ;;  %v1073_v45 = vor.u32 %v1339_v37, %v1070_v39 }
  0x2b   :  { %361 = vmatpush.bf16.msra.mxu0 %v1085_v29  ;;  %v1077_v46 = vor.u32 %v1342_v41, %v1076_v40  ;;  %v1052_v47 = vld [vmem:[#allocation7 + $0x60] sm:$0xf]  ;;  %v1337_v48 = vld [vmem:[#allocation7 + $0x6c] sm:$0xf0]  ;;  %v1335_v49 = vld [vmem:[#allocation7 + $0x64] sm:$0xf]  ;;  %v1081_v50 = vor.u32 %v1340_v42, %v1078_v43 }
  0x2c   :  { %375 = vmatpush.bf16.msra.mxu1 %v1089_v33  ;;  %v1054_v51 = vld [vmem:[#allocation7 + $0x70] sm:$0xf0]  ;;  %v1060_v52 = vld [vmem:[#allocation7 + $0x68] sm:$0xf]  ;;  %v1338_v53 = vld [vmem:[#allocation7 + $0x74] sm:$0xf0]  ;;  %v1053_v56 = vor.u32 %v1337_v48, %v1052_v47 }
  0x2d   :  { %389 = vmatpush.bf16.msra.mxu2 %v1093_v34  ;;  %403 = vmatpush.bf16.msra.mxu3 %v1097_v38  ;;  %v1336_v54 = vld [vmem:[#allocation7 + $0x6c] sm:$0xf]  ;;  %v1062_v55 = vld [vmem:[#allocation7 + $0x78] sm:$0xf0]  ;;  %v1057_v57 = vor.u32 %v1335_v49, %v1054_v51  ;;  %v1061_v58 = vor.u32 %v1338_v53, %v1060_v52  ;;  %v1036_v59 = vld [vmem:[#allocation7 + $0x40] sm:$0xf] }
  0x2e   :  { %v1333_v60 = vld [vmem:[#allocation7 + $0x4c] sm:$0xf0]  ;;  %v1331_v61 = vld [vmem:[#allocation7 + $0x44] sm:$0xf]  ;;  %v1065_v62 = vor.u32 %v1336_v54, %v1062_v55  ;;  %v1038_v63 = vld [vmem:[#allocation7 + $0x50] sm:$0xf0] }
  0x2f   :  { %362 = vmatpush.bf16.msra.mxu0 %v1069_v44  ;;  %v1044_v0 = vld [vmem:[#allocation7 + $0x48] sm:$0xf]  ;;  %v1334_v1 = vld [vmem:[#allocation7 + $0x54] sm:$0xf0]  ;;  %v1332_v2 = vld [vmem:[#allocation7 + $0x4c] sm:$0xf]  ;;  %v1037_v4 = vor.u32 %v1333_v60, %v1036_v59  ;;  %v1041_v5 = vor.u32 %v1331_v61, %v1038_v63 }
  0x30   :  { %376 = vmatpush.bf16.msra.mxu1 %v1073_v45  ;;  %v1046_v3 = vld [vmem:[#allocation7 + $0x58] sm:$0xf0]  ;;  %v1045_v6 = vor.u32 %v1334_v1, %v1044_v0  ;;  %v1020_v7 = vld [vmem:[#allocation7 + $0x20] sm:$0xf]  ;;  %v1329_v8 = vld [vmem:[#allocation7 + $0x2c] sm:$0xf0] }
  0x31   :  { %390 = vmatpush.bf16.msra.mxu2 %v1077_v46  ;;  %404 = vmatpush.bf16.msra.mxu3 %v1081_v50  ;;  %v1327_v9 = vld [vmem:[#allocation7 + $0x24] sm:$0xf]  ;;  %v1049_v10 = vor.u32 %v1332_v2, %v1046_v3  ;;  %v1022_v11 = vld [vmem:[#allocation7 + $0x30] sm:$0xf0]  ;;  %v1028_v12 = vld [vmem:[#allocation7 + $0x28] sm:$0xf]  ;;  %v1021_v16 = vor.u32 %v1329_v8, %v1020_v7 }
  0x32   :  { %v1330_v13 = vld [vmem:[#allocation7 + $0x34] sm:$0xf0]  ;;  %v1328_v14 = vld [vmem:[#allocation7 + $0x2c] sm:$0xf]  ;;  %v1030_v15 = vld [vmem:[#allocation7 + $0x38] sm:$0xf0]  ;;  %v1025_v17 = vor.u32 %v1327_v9, %v1022_v11 }
  0x33   :  { %363 = vmatpush.bf16.msra.mxu0 %v1053_v56  ;;  %v1029_v18 = vor.u32 %v1330_v13, %v1028_v12  ;;  %v1004_v19 = vld [vmem:[#allocation7] sm:$0xf]  ;;  %v1325_v20 = vld [vmem:[#allocation7 + $0xc] sm:$0xf0]  ;;  %v1323_v21 = vld [vmem:[#allocation7 + $0x4] sm:$0xf]  ;;  %v1033_v22 = vor.u32 %v1328_v14, %v1030_v15 }
  0x34   :  { %377 = vmatpush.bf16.msra.mxu1 %v1057_v57  ;;  %v1006_v23 = vld [vmem:[#allocation7 + $0x10] sm:$0xf0]  ;;  %v1012_v24 = vld [vmem:[#allocation7 + $0x8] sm:$0xf]  ;;  %v1326_v25 = vld [vmem:[#allocation7 + $0x14] sm:$0xf0]  ;;  %v1005_v28 = vor.u32 %v1325_v20, %v1004_v19 }
  0x35   :  { %391 = vmatpush.bf16.msra.mxu2 %v1061_v58  ;;  %405 = vmatpush.bf16.msra.mxu3 %v1065_v62  ;;  %v1324_v26 = vld [vmem:[#allocation7 + $0xc] sm:$0xf]  ;;  %v1014_v27 = vld [vmem:[#allocation7 + $0x18] sm:$0xf0]  ;;  %v1009_v29 = vor.u32 %v1323_v21, %v1006_v23  ;;  %v1013_v30 = vor.u32 %v1326_v25, %v1012_v24  ;;  %v1361_v36 = vld [vmem:[#allocation10 + $0x30] sm:$0xff]  ;;  %s1645_s26 = smov [#allocation14]  }
  0x36   :  { %v1017_v31 = vor.u32 %v1324_v26, %v1014_v27  ;;  %v1362_v32 = vld [vmem:[#allocation10 + $0x38] sm:$0xff]  ;;  %v1322_v33 = vld [vmem:[#allocation2] sm:$0xff]  ;;  %v1369_v38 = vld [vmem:[#allocation10 + $0x70] sm:$0xff]  ;;  %s982_s27 = sshll.u32 %s1780_s12, 4  ;;  %s983_s27 = int_to_ptr.hbm [resolvable:$true] %s982_s27 }
  0x37   :  { %364 = vmatpush.bf16.msra.mxu0 %v1037_v4  ;;  %v1370_v34 = vld [vmem:[#allocation10 + $0x78] sm:$0xff]  ;;  %v1377_v39 = vld [vmem:[#allocation10 + $0xb0] sm:$0xff]  ;;  %v1360_v40 = vld [vmem:[#allocation10 + $0x28] sm:$0xff] }
  0x38   :  { %378 = vmatpush.bf16.msra.mxu1 %v1041_v5  ;;  %v1378_v35 = vld [vmem:[#allocation10 + $0xb8] sm:$0xff]  ;;  %v1385_v41 = vld [vmem:[#allocation10 + $0xf0] sm:$0xff]  ;;  %v1368_v42 = vld [vmem:[#allocation10 + $0x68] sm:$0xff] }
  0x39   :  { %392 = vmatpush.bf16.msra.mxu2 %v1045_v6  ;;  %406 = vmatpush.bf16.msra.mxu3 %v1049_v10  ;;  %v1386_v37 = vld [vmem:[#allocation10 + $0xf8] sm:$0xff]  ;;  %v1376_v43 = vld [vmem:[#allocation10 + $0xa8] sm:$0xff]  ;;  %v1359_v44 = vld [vmem:[#allocation10 + $0x20] sm:$0xff] }
  0x3a   :  { %v1384_v45 = vld [vmem:[#allocation10 + $0xe8] sm:$0xff]  ;;  %v1367_v46 = vld [vmem:[#allocation10 + $0x60] sm:$0xff]  ;;  %v1358_v47 = vld [vmem:[#allocation10 + $0x18] sm:$0xff] }
  0x3b   :  { %365 = vmatpush.bf16.msra.mxu0 %v1021_v16  ;;  %v1366_v48 = vld [vmem:[#allocation10 + $0x58] sm:$0xff]  ;;  %v1375_v49 = vld [vmem:[#allocation10 + $0xa0] sm:$0xff]  ;;  %v1357_v51 = vld [vmem:[#allocation10 + $0x10] sm:$0xff] }
  0x3c   :  { %379 = vmatpush.bf16.msra.mxu1 %v1025_v17  ;;  %v1383_v50 = vld [vmem:[#allocation10 + $0xe0] sm:$0xff]  ;;  %v1365_v52 = vld [vmem:[#allocation10 + $0x50] sm:$0xff]  ;;  %v1374_v53 = vld [vmem:[#allocation10 + $0x98] sm:$0xff] }
  0x3d   :  { %393 = vmatpush.bf16.msra.mxu2 %v1029_v18  ;;  %407 = vmatpush.bf16.msra.mxu3 %v1033_v22  ;;  %v1382_v54 = vld [vmem:[#allocation10 + $0xd8] sm:$0xff]  ;;  %v1356_v55 = vld [vmem:[#allocation10 + $0x8] sm:$0xff]  ;;  %v1373_v57 = vld [vmem:[#allocation10 + $0x90] sm:$0xff] }
  0x3e   :  { %v1364_v56 = vld [vmem:[#allocation10 + $0x48] sm:$0xff]  ;;  %v1381_v58 = vld [vmem:[#allocation10 + $0xd0] sm:$0xff]  ;;  %v1355_v59 = vld [vmem:[#allocation10] sm:$0xff] }
  0x3f   :  { %366 = vmatpush.bf16.msra.mxu0 %v1005_v28  ;;  %v1363_v60 = vld [vmem:[#allocation10 + $0x40] sm:$0xff]  ;;  %v1372_v61 = vld [vmem:[#allocation10 + $0x88] sm:$0xff]  ;;  %v1394_v1 = vld [vmem:[#allocation11 + $0x38] sm:$0xff] }
  0x40   :  { %380 = vmatpush.bf16.msra.mxu1 %v1009_v29  ;;  %v1380_v62 = vld [vmem:[#allocation10 + $0xc8] sm:$0xff]  ;;  %v1371_v63 = vld [vmem:[#allocation10 + $0x80] sm:$0xff]  ;;  %v183_v2 = vld [vmem:[#allocation8] sm:$0xf] }
  0x41   :  { %394 = vmatpush.bf16.msra.mxu2 %v1013_v30  ;;  %408 = vmatpush.bf16.msra.mxu3 %v1017_v31  ;;  %v1379_v0 = vld [vmem:[#allocation10 + $0xc0] sm:$0xff]  ;;  %v185_v4 = vperm.slane %v183_v2, 0  ;;  %v186_v6 = vperm.slane %v183_v2, 1  ;;  %v187_v16 = vperm.slane %v183_v2, 2  ;;  %v188_v18 = vperm.slane %v183_v2, 3  ;;  %v1396_v2 = vld [vmem:[#allocation13 + $0x8] sm:$0xff] }
  0x42   :  { %367 = vmatmul.bf16.vlgmr.msra.gmra.mxu0 %v1322_v33 }
  0x43   :  { %687 = vmatpush.bf16.msrb.mxu0 %v1362_v32  ;;  %381 = vmatmul.bf16.vlgmr.msra.gmra.mxu1 %v1322_v33 }
  0x44   :  { %701 = vmatpush.bf16.msrb.mxu1 %v1370_v34  ;;  %395 = vmatmul.bf16.vlgmr.msra.gmra.mxu2 %v1322_v33 }
  0x45   :  { %409 = vmatmul.bf16.vlgmr.msra.gmra.mxu3 %v1322_v33  ;;  %715 = vmatpush.bf16.msrb.mxu2 %v1378_v35  ;;  %v1393_v35 = vld [vmem:[#allocation11 + $0x30] sm:$0xff] }
  0x46   :  { %729 = vmatpush.bf16.msrb.mxu3 %v1386_v37  ;;  %v1391_v37 = vld [vmem:[#allocation11 + $0x20] sm:$0xff] }
  0x47   :  { %688 = vmatpush.bf16.msrb.mxu0 %v1361_v36  ;;  %v1392_v36 = vld [vmem:[#allocation11 + $0x28] sm:$0xff] }
  0x48   :  { %702 = vmatpush.bf16.msrb.mxu1 %v1369_v38  ;;  %v1390_v38 = vld [vmem:[#allocation11 + $0x18] sm:$0xff] }
  0x49   :  { %716 = vmatpush.bf16.msrb.mxu2 %v1377_v39  ;;  %v1389_v39 = vld [vmem:[#allocation11 + $0x10] sm:$0xff] }
  0x4a   :  { %730 = vmatpush.bf16.msrb.mxu3 %v1385_v41  ;;  %v1387_v41 = vld [vmem:[#allocation11] sm:$0xff] }
  0x4b   :  { %689 = vmatpush.bf16.msrb.mxu0 %v1360_v40  ;;  %v1388_v40 = vld [vmem:[#allocation11 + $0x8] sm:$0xff] }
  0x4c   :  { %703 = vmatpush.bf16.msrb.mxu1 %v1368_v42  ;;  %v1402_v42 = vld [vmem:[#allocation13 + $0x38] sm:$0xff] }
  0x4d   :  { %717 = vmatpush.bf16.msrb.mxu2 %v1376_v43  ;;  %v1401_v43 = vld [vmem:[#allocation13 + $0x30] sm:$0xff] }
  0x4e   :  { %731 = vmatpush.bf16.msrb.mxu3 %v1384_v45 }
  0x4f   :  { %690 = vmatpush.bf16.msrb.mxu0 %v1359_v44  ;;  %v1400_v44 = vld [vmem:[#allocation13 + $0x28] sm:$0xff] }
  0x50   :  { %704 = vmatpush.bf16.msrb.mxu1 %v1367_v46  ;;  %v1399_v46 = vld [vmem:[#allocation13 + $0x20] sm:$0xff] }
  0x51   :  { %718 = vmatpush.bf16.msrb.mxu2 %v1375_v49 }
  0x52   :  { %732 = vmatpush.bf16.msrb.mxu3 %v1383_v50 }
  0x53   :  { %691 = vmatpush.bf16.msrb.mxu0 %v1358_v47 }
  0x54   :  { %705 = vmatpush.bf16.msrb.mxu1 %v1366_v48  ;;  %v1418_v48 = vld [vmem:[%s1773_s5] ss:$0 sm:$0xff] }
  0x55   :  { %719 = vmatpush.bf16.msrb.mxu2 %v1374_v53 }
  0x56   :  { %733 = vmatpush.bf16.msrb.mxu3 %v1382_v54 }
  0x57   :  { %692 = vmatpush.bf16.msrb.mxu0 %v1357_v51 }
  0x58   :  { %706 = vmatpush.bf16.msrb.mxu1 %v1365_v52 }
  0x59   :  { %720 = vmatpush.bf16.msrb.mxu2 %v1373_v57 }
  0x5a   :  { %734 = vmatpush.bf16.msrb.mxu3 %v1381_v58 }
  0x5b   :  { %693 = vmatpush.bf16.msrb.mxu0 %v1356_v55 }
  0x5c   :  { %707 = vmatpush.bf16.msrb.mxu1 %v1364_v56 }
  0x5d   :  { %721 = vmatpush.bf16.msrb.mxu2 %v1372_v61 }
  0x5e   :  { %735 = vmatpush.bf16.msrb.mxu3 %v1380_v62 }
  0x5f   :  { %694 = vmatpush.bf16.msrb.mxu0 %v1355_v59 }
  0x60   :  { %708 = vmatpush.bf16.msrb.mxu1 %v1363_v60 }
  0x61   :  { %722 = vmatpush.bf16.msrb.mxu2 %v1371_v63 }
  0x62   :  { %736 = vmatpush.bf16.msrb.mxu3 %v1379_v0  ;;  %v1398_v0 = vld [vmem:[#allocation13 + $0x18] sm:$0xff] }
  0x63   :  { %812 = vmatpush.bf16.msra.mxu0 %v1394_v1  ;;  %v1397_v1 = vld [vmem:[#allocation13 + $0x10] sm:$0xff] }
  0x64   :  { %897 = vmatpush.bf16.msra.mxu1 %v1402_v42 }
  0x67   :  { %813 = vmatpush.bf16.msra.mxu0 %v1393_v35 }
  0x68   :  { %898 = vmatpush.bf16.msra.mxu1 %v1401_v43 }
  0x6b   :  { %814 = vmatpush.bf16.msra.mxu0 %v1392_v36 }
  0x6c   :  { %899 = vmatpush.bf16.msra.mxu1 %v1400_v44 }
  0x6f   :  { %815 = vmatpush.bf16.msra.mxu0 %v1391_v37 }
  0x70   :  { %900 = vmatpush.bf16.msra.mxu1 %v1399_v46 }
  0x73   :  { %816 = vmatpush.bf16.msra.mxu0 %v1390_v38 }
  0x74   :  { %901 = vmatpush.bf16.msra.mxu1 %v1398_v0 }
  0x77   :  { %817 = vmatpush.bf16.msra.mxu0 %v1389_v39 }
  0x78   :  { %902 = vmatpush.bf16.msra.mxu1 %v1397_v1 }
  0x7b   :  { %818 = vmatpush.bf16.msra.mxu0 %v1388_v40 }
  0x7c   :  { %903 = vmatpush.bf16.msra.mxu1 %v1396_v2 }
  0x7f   :  { %819 = vmatpush.bf16.msra.mxu0 %v1387_v41 }
  0xbf   :  { %v368_v3 = vpop.f32.mrf.mxu0 }
  0xc0   :  { %v382_v5 = vpop.f32.mrf.mxu1  ;;  %v369_v7 = vadd.f32 %v368_v3, %v185_v4  ;;  %v1395_v3 = vld [vmem:[#allocation13] sm:$0xff] }
  0xc1   :  { %v383_v8 = vadd.f32 %v382_v5, %v186_v6  ;;  %904 = vmatpush.bf16.msra.mxu1 %v1395_v3  ;;  %v1419_v5 = vld [vmem:[%s1775_s7] ss:$0 sm:$0xff] }
  0xc2   :  { %v415_v12 = vmax.f32 %v369_v7, 0.0 }
  0xc3   :  { %v416_v15 = vmax.f32 %v383_v8, 0.0 }
  0xc7   :  { %v396_v9 = vpop.f32.mrf.mxu2  ;;  %v370_v11 = vpop.f32.mrf.mxu0 }
  0xc8   :  { %v410_v10 = vpop.f32.mrf.mxu3  ;;  %v371_v13 = vadd.f32 %v370_v11, %v185_v4  ;;  %v384_v14 = vpop.f32.mrf.mxu1  ;;  %v397_v22 = vadd.f32 %v396_v9, %v187_v16 }
  0xc9   :  { %v385_v17 = vadd.f32 %v384_v14, %v186_v6  ;;  %v411_v24 = vadd.f32 %v410_v10, %v188_v18  ;;  %v911_v14 = vld [vmem:[#allocation5] sm:$0xff] }
  0xca   :  { %v419_v19 = vmax.f32 %v371_v13, 0.0  ;;  %v417_v29 = vmax.f32 %v397_v22, 0.0 }
  0xcb   :  { %v420_v20 = vmax.f32 %v385_v17, 0.0  ;;  %v418_v31 = vmax.f32 %v411_v24, 0.0 }
  0xcc   :  { %v423_v21 = vpack.c.bf16 %v419_v19, %v415_v12  ;;  %v1420_v12 = vld [vmem:[%s1777_s9] ss:$0 sm:$0xff] }
  0xcd   :  { %v424_v23 = vpack.c.bf16 %v420_v20, %v416_v15 }
  0xce   :  { %695 = vmatmul.bf16.vlgmr.msrb.gmra.mxu0 %v423_v21  ;;  %v1644_v21 = vmov 128.0  }
  0xcf   :  { %v398_v25 = vpop.f32.mrf.mxu2  ;;  %709 = vmatmul.bf16.vlgmr.msrb.gmra.mxu1 %v424_v23  ;;  %1423 = vrcp.f32 %v1644_v21 }
  0xd0   :  { %v399_v26 = vadd.f32 %v398_v25, %v187_v16  ;;  %v412_v27 = vpop.f32.mrf.mxu3 }
  0xd1   :  { %v413_v28 = vadd.f32 %v412_v27, %v188_v18  ;;  %v912_v18 = vld [vmem:[#allocation5 + $0x8] sm:$0xff] }
  0xd2   :  { %v421_v30 = vmax.f32 %v399_v26, 0.0 }
  0xd3   :  { %v422_v32 = vmax.f32 %v413_v28, 0.0 }
  0xd4   :  { %v425_v33 = vpack.c.bf16 %v421_v30, %v417_v29 }
  0xd5   :  { %v426_v34 = vpack.c.bf16 %v422_v32, %v418_v31  ;;  %v1424_v22 = vpop.eup %1423 }
  0xd6   :  { %723 = vmatmul.bf16.vlgmr.msrb.gmra.mxu2 %v425_v33  ;;  %v920_v23 = vmul.f32 128.0, %v1424_v22  ;;  %vm924_vm0 = vweird.f32 %v1424_v22 }
  0xd7   :  { %737 = vmatmul.bf16.vlgmr.msrb.gmra.mxu3 %v426_v34 }
  0xd8   :  { %v921_v24 = vsub.f32 1.0, %v920_v23 }
  0xda   :  { %v922_v25 = vmul.f32 %v1424_v22, %v921_v24 }
  0xdc   :  { %v923_v26 = vadd.f32 %v1424_v22, %v922_v25 }
  0xde   :  { %v925_v27 = vsel %vm924_vm0, %v1424_v22, %v923_v26 }
 0x14b   :  { %v696_v45 = vpop.f32.mrf.mxu0 }
 0x14c   :  { %v710_v47 = vpop.f32.mrf.mxu1  ;;  %v697_v51 = vadd.f32 %v1418_v48, %v696_v45 }
 0x14e   :  { %v711_v54 = vadd.f32 %v710_v47, %v697_v51 }
 0x153   :  { %v698_v49 = vpop.f32.mrf.mxu0 }
 0x154   :  { %v699_v53 = vadd.f32 %v1418_v48, %v698_v49  ;;  %v712_v55 = vpop.f32.mrf.mxu1 }
 0x156   :  { %v713_v56 = vadd.f32 %v712_v55, %v699_v53 }
 0x159   :  { %v724_v50 = vpop.f32.mrf.mxu2 }
 0x15a   :  { %v738_v52 = vpop.f32.mrf.mxu3  ;;  %v725_v57 = vadd.f32 %v724_v50, %v711_v54  ;;  %v1421_v50 = vld [vmem:[%s1778_s10] ss:$0 sm:$0xff]  ;;  %s980_s10 = sshll.u32 %s1645_s26, 4  ;;  %s981_s10 = int_to_ptr.vmem [resolvable:$true] %s980_s10 }
 0x15b   :  { %v1422_v54 = vld [vmem:[%s1779_s11] ss:$0 sm:$0xff] }
 0x15c   :  { %v739_v61 = vadd.f32 %v738_v52, %v725_v57 }
 0x161   :  { %v726_v58 = vpop.f32.mrf.mxu2 }
 0x162   :  { %v727_v59 = vadd.f32 %v726_v58, %v713_v56  ;;  %v740_v60 = vpop.f32.mrf.mxu3 }
 0x164   :  { %v741_v62 = vadd.f32 %v740_v60, %v727_v59 }
 0x166   :  { %v743_v63 = vpack.c.bf16 %v741_v62, %v739_v61 }
 0x168   :  { %820 = vmatmul.bf16.vlgmr.msra.gmra.mxu0 %v743_v63 }
 0x1e5   :  { %v821_v4 = vpop.f32.mrf.mxu0 }
 0x1e6   :  { %v822_v6 = vadd.f32 %v1419_v5, %v821_v4 }
 0x1e8   :  { %v826_v9 = vmax.f32 %v822_v6, 0.0 }
 0x1ed   :  { %v823_v7 = vpop.f32.mrf.mxu0 }
 0x1ee   :  { %v824_v8 = vadd.f32 %v1419_v5, %v823_v7 }
 0x1f0   :  { %v827_v10 = vmax.f32 %v824_v8, 0.0 }
 0x1f2   :  { %v828_v11 = vpack.c.bf16 %v827_v10, %v826_v9 }
 0x1f4   :  { %905 = vmatmul.bf16.vlgmr.msra.gmra.mxu1 %v828_v11 }
 0x271   :  { %v906_v13 = vpop.f32.mrf.mxu1 }
 0x272   :  { %v907_v15 = vadd.f32 %v1420_v12, %v906_v13 }
 0x274   :  { %v913_v16 = vadd.f32 %v911_v14, %v907_v15 }
 0x276   :  { %915 = vadd.xlane.f32.xlu0 %v913_v16 }
 0x279   :  { %v908_v17 = vpop.f32.mrf.mxu1 }
 0x27a   :  { %v909_v19 = vadd.f32 %v1420_v12, %v908_v17 }
 0x27c   :  { %v914_v20 = vadd.f32 %v912_v18, %v909_v19 }
 0x27e   :  { %917 = vadd.xlane.f32.xlu0 %v914_v20 }
 0x2e9   :  { %v916_v28 = vpop.xlane.xlu0 %915 }
 0x2ea   :  { %v926_v29 = vmul.f32 %v925_v27, %v916_v28 }
 0x2ec   :  { %v928_v30 = vsub.f32 %v913_v16, %v926_v29 }
 0x2ee   :  { %v930_v31 = vmul.f32 %v928_v30, %v928_v30 }
 0x2f0   :  { %932 = vadd.xlane.f32.xlu1 %v930_v31 }
 0x2f1   :  { %v918_v32 = vpop.xlane.xlu0 %917 }
 0x2f2   :  { %v927_v33 = vmul.f32 %v925_v27, %v918_v32 }
 0x2f4   :  { %v929_v34 = vsub.f32 %v914_v20, %v927_v33 }
 0x2f6   :  { %v931_v35 = vmul.f32 %v929_v34, %v929_v34 }
 0x2f8   :  { %934 = vadd.xlane.f32.xlu1 %v931_v35 }
 0x363   :  { %v933_v36 = vpop.xlane.xlu1 %932 }
 0x364   :  { %v936_v37 = vmul.f32 %v933_v36, %v925_v27 }
 0x366   :  { %v938_v38 = vadd.f32 1e-12, %v936_v37 }
 0x368   :  { %1425 = vrsqrt.f32 %v938_v38  ;;  %vm946_vm2 = vweird.f32 %v938_v38 }
 0x36b   :  { %v935_v39 = vpop.xlane.xlu1 %934 }
 0x36c   :  { %v937_v40 = vmul.f32 %v935_v39, %v925_v27 }
 0x36e   :  { %v1426_v41 = vpop.eup %1425  ;;  %v939_v42 = vadd.f32 1e-12, %v937_v40 }
 0x36f   :  { %v941_v43 = vmul.f32 %v1426_v41, %v938_v38  ;;  %vm947_vm1 = vweird.f32 %v1426_v41 }
 0x370   :  { %1427 = vrsqrt.f32 %v939_v42  ;;  %vm948_vm3 = vmor %vm946_vm2, %vm947_vm1  ;;  %vm956_vm5 = vweird.f32 %v939_v42 }
 0x371   :  { %v942_v44 = vmul.f32 %v1426_v41, %v941_v43 }
 0x373   :  { %v943_v45 = vmul.f32 0.5, %v942_v44 }
 0x375   :  { %v944_v46 = vsub.f32 1.5, %v943_v45 }
 0x376   :  { %v1428_v47 = vpop.eup %1427 }
 0x377   :  { %v945_v48 = vmul.f32 %v1426_v41, %v944_v46  ;;  %v951_v49 = vmul.f32 %v1428_v47, %v939_v42  ;;  %vm957_vm4 = vweird.f32 %v1428_v47 }
 0x378   :  { %vm958_vm6 = vmor %vm956_vm5, %vm957_vm4 }
 0x379   :  { %v949_v51 = vsel %vm948_vm3, %v1426_v41, %v945_v48  ;;  %v952_v52 = vmul.f32 %v1428_v47, %v951_v49 }
 0x37a   :  { %v960_v53 = vmul.f32 %v949_v51, %v928_v30 }
 0x37b   :  { %v953_v55 = vmul.f32 0.5, %v952_v52 }
 0x37c   :  { %v966_v56 = vmul.f32 %v1421_v50, %v960_v53 }
 0x37d   :  { %v954_v57 = vsub.f32 1.5, %v953_v55 }
 0x37e   :  { %v972_v58 = vadd.f32 %v1422_v54, %v966_v56 }
 0x37f   :  { %v955_v59 = vmul.f32 %v1428_v47, %v954_v57 }
 0x380   :  { %974 = vst [vmem:[#allocation14] sm:$0xff] %v972_v58 }
 0x381   :  { %v959_v60 = vsel %vm958_vm6, %v1428_v47, %v955_v59 }
 0x382   :  { %v961_v61 = vmul.f32 %v959_v60, %v929_v34 }
 0x384   :  { %v967_v62 = vmul.f32 %v1421_v50, %v961_v61 }
 0x386   :  { %v973_v63 = vadd.f32 %v1422_v54, %v967_v62 }
 0x388   :  { %975 = vst [vmem:[#allocation14 + $0x8] sm:$0xff] %v973_v63 }
 0x389   :  { %988 = dma.vmem_to_hbm [thread:$0]  %s981_s10, 256, %s983_s27, [#allocation4], %s1632_s29, %s1632_s29, %s1633_s30  }
 0x38a   :  { %1629 = dma.done.wait [#allocation4], 256  }
 0x38b   :  { %1630 = vsyncadd [#allocation4], 4294967040 }
 0x38c   :  { %993 = vsyncpa [#allocation3], 1 }
 0x38d   :  { %994 = vsyncpa [#allocation6], 1 }
 0x38e   :  { %995 = vsyncpa [#allocation9], 1 }
 0x38f   :  { %996 = vsyncpa [#allocation12], 1 }
 0x390   :  { %997 = vsyncpa [#allocation4], 1 }

</bundles_post_ra>
